<compile_context>
chip_gen: v5e
topology: v5e:2x2
jax: 0.10.0
libtpu: 0.0.40
codegen_flags: <defaults>
</compile_context>

<pallas_src>
import jax
import jax.numpy as jnp
from jax.experimental import pallas as pl
from jax.experimental.pallas import tpu as pltpu

_LN_EPS = 1e-5             # torch.nn.LayerNorm default eps
_SUBLANE = 16              # batch-tile granularity safe for f32 (8) and bf16 (16) blocks
_MAX_GATHER_RELATIONS = 256  # in-kernel one-hot gather only while the (nrelation, .)
                             # table and the (tb, nrelation) one-hot stay small in VMEM


def _regularizer(x):
    # TODO(synk): assumed clamp-to-[0,1]; replace if the real regularizer differs.
    return jnp.clip(x, 0.0, 1.0)


def _layernorm(x):
    # LayerNorm(elementwise_affine=False), one-pass mean / mean-of-squares.
    mean = jnp.mean(x, axis=-1, keepdims=True)
    mean_sq = jnp.mean(x * x, axis=-1, keepdims=True)
    var = mean_sq - mean * mean
    return (x - mean) * jax.lax.rsqrt(var + _LN_EPS)


def _pick_tb(batch, block_b):
    """Largest batch tile <= block_b (multiple of _SUBLANE); when the batch is big
    enough keep >=2 grid steps so the 'parallel' axis can shard across both of
    v7x's TensorCores."""
    tb = min(block_b, batch)
    if tb == batch and batch >= 2 * _SUBLANE and batch % (2 * _SUBLANE) == 0:
        tb = batch // 2
    if tb != batch:
        tb = max(_SUBLANE, (tb // _SUBLANE) * _SUBLANE)
    return tb


def _row_spec(tb, d):
    return pl.BlockSpec((tb, d), lambda i: (i, 0))


def _full_spec(a):
    # constant-index full-extent block -> stays resident across grid steps
    return pl.BlockSpec(a.shape, lambda i, nd=a.ndim: (0,) * nd)


def _bytes(*arrays):
    return sum(int(a.size) * jnp.dtype(a.dtype).itemsize for a in arrays)


def _one_hot(rid_ref, nrelation):
    # (tb, 1) int32 ids -> (tb, nrelation) f32 one-hot.  one_hot @ f32 table is an
    # exact row gather on the MXU.
    tb = rid_ref.shape[0]
    iota = jax.lax.broadcasted_iota(jnp.int32, (tb, nrelation), 1)
    return (rid_ref[...] == iota).astype(jnp.float32)


# ----------------------------------------------------------------------------
# projection_type == 'mlp'
# ----------------------------------------------------------------------------
def _mlp_tail(h_pre1, w, o_ref):
    """w = [W2, b2, ..., W{L}, b{L}, W0, b0] refs; weights pre-cast to MXU dtype."""
    num_layers = len(w) // 2
    h = jnp.maximum(h_pre1, 0.0)                             # ReLU after layer 1
    idx = 0
    for _ in range(num_layers - 1):                          # layers 2..L (+ReLU)
        h = jnp.dot(h.astype(w[idx].dtype), w[idx][...],
                    preferred_element_type=jnp.float32) + w[idx + 1][...]
        h = jnp.maximum(h, 0.0)
        idx += 2
    out = jnp.dot(h.astype(w[idx].dtype), w[idx][...],       # layer 0, no ReLU
                  preferred_element_type=jnp.float32) + w[idx + 1][...]
    o_ref[...] = _regularizer(out).astype(o_ref.dtype)


def _mlp_gather_kernel(rid_ref, e_ref, w1e_ref, relh1_ref, *refs):
    # layer1(concat([e, rel_emb[rid]])) ==
    #     e @ W1[:E]  +  one_hot(rid) @ (rel_emb @ W1[E:] + b1)
    # i.e. the relation gather and the relation half of layer 1 are folded into
    # the small resident (nrelation, hidden) table `relh1`.
    o_ref, w = refs[-1], refs[:-1]
    onehot = _one_hot(rid_ref, relh1_ref.shape[0])
    h = (jnp.dot(e_ref[...], w1e_ref[...], preferred_element_type=jnp.float32)
         + jnp.dot(onehot, relh1_ref[...], preferred_element_type=jnp.float32))
    _mlp_tail(h, w, o_ref)


def _mlp_concat_kernel(x_ref, w1_ref, b1_ref, *refs):
    # Fallback for large relation vocabularies: x = concat([e, rel_emb[rid]]) built
    # in the wrapper, layer 1 is a single K = E + R matmul.
    o_ref, w = refs[-1], refs[:-1]
    h = jnp.dot(x_ref[...], w1_ref[...],
                preferred_element_type=jnp.float32) + b1_ref[...]
    _mlp_tail(h, w, o_ref)


def projection_mlp_forward(e_embedding, rid, relation_embedding, weights, biases, *,
                           block_b=2048, matmul_dtype=jnp.bfloat16,
                           max_gather_relations=_MAX_GATHER_RELATIONS,
                           vmem_limit_bytes=None):
    """weights/biases ordered [layer1, ..., layer{num_layers}, layer0];
    weight k has shape (in_dim, out_dim) (transposed vs. torch Linear.weight)."""
    B, E = e_embedding.shape
    num_layers = len(weights) - 1
    nrelation, R = relation_embedding.shape
    w1 = weights[0]                                   # (E + R, hidden)
    hidden = w1.shape[1]
    out_dim = weights[-1].shape[1]
    tb = _pick_tb(B, block_b)

    # layers 2..num_layers and layer0: bf16 MXU operands, f32 biases.
    tail = []
    for k in range(1, num_layers + 1):
        tail += [weights[k].astype(matmul_dtype),
                 biases[k].reshape(1, -1).astype(jnp.float32)]

    if nrelation <= max_gather_relations:
        rel_h1 = (relation_embedding @ w1[E:] + biases[0]).astype(jnp.float32)
        args = [rid.reshape(B, 1).astype(jnp.int32),
                e_embedding.astype(matmul_dtype),
                w1[:E].astype(matmul_dtype), rel_h1, *tail]
        in_specs = [_row_spec(tb, 1), _row_spec(tb, E)] + [_full_spec(a) for a in args[2:]]
        kernel = _mlp_gather_kernel
    else:
        x = jnp.concatenate([e_embedding, jnp.take(relation_embedding, rid, axis=0)],
                            axis=-1).astype(matmul_dtype)
        args = [x, w1.astype(matmul_dtype),
                biases[0].reshape(1, -1).astype(jnp.float32), *tail]
        in_specs = [_row_spec(tb, E + R)] + [_full_spec(a) for a in args[1:]]
        kernel = _mlp_concat_kernel

    flops = 2 * B * ((E + R) * hidden
                     + (num_layers - 1) * hidden * hidden
                     + hidden * out_dim)
    return pl.pallas_call(
        kernel,
        out_shape=jax.ShapeDtypeStruct((B, out_dim), e_embedding.dtype),
        grid=(pl.cdiv(B, tb),),
        in_specs=in_specs,
        out_specs=_row_spec(tb, out_dim),
        compiler_params=pltpu.CompilerParams(
            dimension_semantics=("parallel",),
            # TODO(synk): raise vmem_limit_bytes (and/or single-buffer the resident
            # weight blocks / pad feature dims to 128 lanes) for production-sized
            # shapes on v7x/v5e.
            vmem_limit_bytes=vmem_limit_bytes),
        cost_estimate=pl.CostEstimate(flops=int(flops), transcendentals=0,
                                      bytes_accessed=_bytes(*args) + B * out_dim * 4),
    )(*args)


# ----------------------------------------------------------------------------
# projection_type == 'rtransform' (non-dual)
# ----------------------------------------------------------------------------
def _rtransform_kernel(e_ref, att_ref, base_ref, bias_ref, o_ref, x_scr):
    # out = LN( sum_r att[:, r] * (e @ base[r]) + att @ rel_bias ) folded into ONE
    # deep-K MXU call: x[:, r*H:(r+1)*H] = att[:, r] * e ; out = x @ base_flat.
    att = att_ref[...]                                  # (tb, n_base) f32
    e = e_ref[...]                                      # (tb, H) bf16
    n_base, H = att.shape[1], e.shape[1]
    for r in range(n_base):                             # small & static -> unrolled
        x_scr[:, r * H:(r + 1) * H] = att[:, r:r + 1] * e
    acc = jnp.dot(x_scr[...].astype(base_ref.dtype), base_ref[...],
                  preferred_element_type=jnp.float32)   # K = n_base * H
    # bias = att @ rel_bias: the module always takes this branch because
    # rel_bias.shape[0] == rel_base.shape[0] == n_base by construction.
    acc = acc + jnp.dot(att, bias_ref[...], preferred_element_type=jnp.float32)
    o_ref[...] = _regularizer(_layernorm(acc)).astype(o_ref.dtype)


def projection_rtransform_forward(e_embedding, rid, rel_att, rel_base, rel_bias, *,
                                  block_b=2048, matmul_dtype=jnp.bfloat16,
                                  vmem_limit_bytes=None):
    B, H = e_embedding.shape
    n_base = rel_base.shape[0]
    tb = _pick_tb(B, block_b)
    att = jnp.take(rel_att, rid, axis=0).astype(jnp.float32)        # (B, n_base) tiny
    base_flat = rel_base.reshape(n_base * H, H).astype(matmul_dtype)
    bias = rel_bias.astype(jnp.float32)
    args = [e_embedding.astype(matmul_dtype), att, base_flat, bias]
    flops = 2 * B * n_base * H * H + 2 * B * n_base * H + 8 * B * H
    return pl.pallas_call(
        _rtransform_kernel,
        out_shape=jax.ShapeDtypeStruct((B, H), e_embedding.dtype),
        grid=(pl.cdiv(B, tb),),
        in_specs=[_row_spec(tb, H), _row_spec(tb, n_base),
                  _full_spec(base_flat), _full_spec(bias)],
        out_specs=_row_spec(tb, H),
        scratch_shapes=[pltpu.VMEM((tb, n_base * H), jnp.float32)],
        compiler_params=pltpu.CompilerParams(
            dimension_semantics=("parallel",), vmem_limit_bytes=vmem_limit_bytes),
        cost_estimate=pl.CostEstimate(flops=int(flops), transcendentals=B,
                                      bytes_accessed=_bytes(*args) + B * H * 4),
    )(*args)


# ----------------------------------------------------------------------------
# projection_type == 'rtransform' (dual)
# ----------------------------------------------------------------------------
def _rtransform_dual_kernel(e_ref, att1_ref, att2_ref, b1_ref, b2_ref,
                            base1_ref, base2_ref, o_ref, x1_scr, x2_scr):
    half = b1_ref.shape[1]

    def half_out(e_h, att_ref, b_ref, base_ref, x_scr):
        att = att_ref[...]
        for r in range(att.shape[1]):
            x_scr[:, r * half:(r + 1) * half] = att[:, r:r + 1] * e_h
        acc = jnp.dot(x_scr[...].astype(base_ref.dtype), base_ref[...],
                      preferred_element_type=jnp.float32) + b_ref[...]
        return _regularizer(_layernorm(acc))

    # single full-width input/output block: no wrapper-side chunk / concat HBM trips
    o_ref[:, :half] = half_out(e_ref[:, :half], att1_ref, b1_ref, base1_ref,
                               x1_scr).astype(o_ref.dtype)
    o_ref[:, half:] = half_out(e_ref[:, half:], att2_ref, b2_ref, base2_ref,
                               x2_scr).astype(o_ref.dtype)


def projection_rtransform_dual_forward(e_embedding, rid,
                                       rel_att1, rel_base1, rel_bias1,
                                       rel_att2, rel_base2, rel_bias2, *,
                                       block_b=2048, matmul_dtype=jnp.bfloat16,
                                       vmem_limit_bytes=None):
    B, H = e_embedding.shape
    half = H // 2
    n_base = rel_base1.shape[0]
    tb = _pick_tb(B, block_b)
    att1 = jnp.take(rel_att1, rid, axis=0).astype(jnp.float32)
    att2 = jnp.take(rel_att2, rid, axis=0).astype(jnp.float32)
    b1 = jnp.take(rel_bias1, rid, axis=0).astype(jnp.float32)
    b2 = jnp.take(rel_bias2, rid, axis=0).astype(jnp.float32)
    base1 = rel_base1.reshape(n_base * half, half).astype(matmul_dtype)
    base2 = rel_base2.reshape(n_base * half, half).astype(matmul_dtype)
    args = [e_embedding.astype(matmul_dtype), att1, att2, b1, b2, base1, base2]
    flops = 2 * (2 * B * n_base * half * half) + 16 * B * half
    return pl.pallas_call(
        _rtransform_dual_kernel,
        out_shape=jax.ShapeDtypeStruct((B, H), e_embedding.dtype),
        grid=(pl.cdiv(B, tb),),
        in_specs=[_row_spec(tb, H), _row_spec(tb, n_base), _row_spec(tb, n_base),
                  _row_spec(tb, half), _row_spec(tb, half),
                  _full_spec(base1), _full_spec(base2)],
        out_specs=_row_spec(tb, H),
        scratch_shapes=[pltpu.VMEM((tb, n_base * half), jnp.float32),
                        pltpu.VMEM((tb, n_base * half), jnp.float32)],
        compiler_params=pltpu.CompilerParams(
            dimension_semantics=("parallel",), vmem_limit_bytes=vmem_limit_bytes),
        cost_estimate=pl.CostEstimate(flops=int(flops), transcendentals=B,
                                      bytes_accessed=_bytes(*args) + B * H * 4),
    )(*args)


# ----------------------------------------------------------------------------
# projection_type == 'transe'
# ----------------------------------------------------------------------------
def _transe_gather_kernel(rid_ref, e_ref, table_ref, o_ref):
    # table = [rel_trans | rel_bias]; both relation gathers done in-kernel via an
    # exact f32 one-hot @ table matmul (removes the wrapper's (B, E) HBM gathers).
    E = e_ref.shape[1]
    onehot = _one_hot(rid_ref, table_ref.shape[0])
    g = jnp.dot(onehot, table_ref[...], preferred_element_type=jnp.float32)  # (tb, 2E)
    y = e_ref[...].astype(jnp.float32) * g[:, :E] + g[:, E:]
    o_ref[...] = _regularizer(_layernorm(y)).astype(o_ref.dtype)


def _transe_kernel(e_ref, rt_ref, rb_ref, o_ref):
    y = e_ref[...].astype(jnp.float32) * rt_ref[...] + rb_ref[...]
    o_ref[...] = _regularizer(_layernorm(y)).astype(o_ref.dtype)


def projection_transe_forward(e_embedding, rid, rel_trans, rel_bias, *,
                              block_b=4096,
                              max_gather_relations=_MAX_GATHER_RELATIONS,
                              vmem_limit_bytes=None):
    B, E = e_embedding.shape
    nrelation = rel_trans.shape[0]
    tb = _pick_tb(B, block_b)
    if nrelation <= max_gather_relations:
        table = jnp.concatenate([rel_trans, rel_bias], axis=-1).astype(jnp.float32)
        args = [rid.reshape(B, 1).astype(jnp.int32), e_embedding, table]
        in_specs = [_row_spec(tb, 1), _row_spec(tb, E), _full_spec(table)]
        kernel = _transe_gather_kernel
        flops = 4 * B * nrelation * E + 10 * B * E
    else:
        args = [e_embedding, jnp.take(rel_trans, rid, axis=0),
                jnp.take(rel_bias, rid, axis=0)]
        in_specs = [_row_spec(tb, E)] * 3
        kernel = _transe_kernel
        flops = 10 * B * E
    return pl.pallas_call(
        kernel,
        out_shape=jax.ShapeDtypeStruct((B, E), e_embedding.dtype),
        grid=(pl.cdiv(B, tb),),
        in_specs=in_specs,
        out_specs=_row_spec(tb, E),
        compiler_params=pltpu.CompilerParams(
            dimension_semantics=("parallel",), vmem_limit_bytes=vmem_limit_bytes),
        cost_estimate=pl.CostEstimate(flops=int(flops), transcendentals=B,
                                      bytes_accessed=_bytes(*args) + B * E * 4),
    )(*args)


# ----------------------------------------------------------------------------
# pure-JAX f32 references (mirror the PyTorch forward)
# ----------------------------------------------------------------------------
def _ref_mlp(e, rid, rel_emb, weights, biases):
    x = jnp.concatenate([e, rel_emb[rid]], axis=-1)
    for k in range(len(weights) - 1):
        x = jax.nn.relu(x @ weights[k] + biases[k])
    x = x @ weights[-1] + biases[-1]
    return jnp.clip(x, 0.0, 1.0)


def _ref_rtransform(e, rid, rel_att, rel_base, rel_bias):
    att = rel_att[rid]
    proj = jnp.einsum("br,rio->bio", att, rel_base)
    bias = jnp.einsum("br,ri->bi", att, rel_bias)
    out = jnp.einsum("bio,bi->bo", proj, e) + bias
    return jnp.clip(_layernorm(out), 0.0, 1.0)


def _ref_rtransform_dual(e, rid, p1, p2):
    half = e.shape[-1] // 2

    def half_fn(eh, att, base, bias):
        proj = jnp.einsum("br,rio->bio", att[rid], base)
        return _layernorm(jnp.einsum("bio,bi->bo", proj, eh) + bias[rid])

    o = jnp.concatenate([half_fn(e[:, :half], *p1), half_fn(e[:, half:], *p2)], axis=-1)
    return jnp.clip(o, 0.0, 1.0)


def _ref_transe(e, rid, rel_trans, rel_bias):
    return jnp.clip(_layernorm(e * rel_trans[rid] + rel_bias[rid]), 0.0, 1.0)


# ----------------------------------------------------------------------------
if __name__ == "__main__":
    jax.config.update("jax_default_matmul_precision", "highest")

    B = 32
    entity_dim = 32          # == n_partitions so one e_embedding serves every path
    relation_dim = 32        # layer1 input is entity_dim + relation_dim
    hidden_dim = 64          # projection_dim
    num_layers = 2
    nrelation = 12
    n_base = 4
    n_partitions = entity_dim

    keys = jax.random.split(jax.random.PRNGKey(0), 20)
    e_embedding = jax.random.uniform(keys[0], (B, entity_dim), dtype=jnp.float32)
    rid = jax.random.randint(keys[1], (B,), 0, nrelation)

    # --- mlp params ---
    relation_embedding = jax.random.uniform(keys[2], (nrelation, relation_dim), jnp.float32)
    dims = [entity_dim + relation_dim] + [hidden_dim] * num_layers + [entity_dim]
    mlp_w = [jax.random.normal(keys[3 + li], (dims[li], dims[li + 1]), jnp.float32) * 0.1
             for li in range(num_layers + 1)]
    mlp_b = [jax.random.normal(keys[6 + li], (dims[li + 1],), jnp.float32) * 0.01
             for li in range(num_layers + 1)]

    # --- rtransform (non-dual) params ---
    rel_base = jax.random.normal(keys[9], (n_base, n_partitions, n_partitions), jnp.float32) * 0.1
    rel_bias_nd = jax.random.normal(keys[10], (n_base, n_partitions), jnp.float32) * 0.1
    rel_att = jax.random.normal(keys[11], (nrelation, n_base), jnp.float32)

    # --- rtransform (dual) params ---
    half = n_partitions // 2
    rel_base1 = jax.random.uniform(keys[12], (n_base, half, half), jnp.float32, minval=0.0, maxval=0.01)
    rel_bias1 = jax.random.normal(keys[13], (nrelation, half), jnp.float32) * 0.1
    rel_att1 = jax.random.normal(keys[14], (nrelation, n_base), jnp.float32)
    rel_base2 = jax.random.uniform(keys[15], (n_base, half, half), jnp.float32, minval=0.0, maxval=0.01)
    rel_bias2 = jax.random.normal(keys[16], (nrelation, half), jnp.float32) * 0.1
    rel_att2 = jax.random.normal(keys[17], (nrelation, n_base), jnp.float32)

    # --- transe params ---
    rel_trans = jax.random.normal(keys[18], (nrelation, entity_dim), jnp.float32) * 0.1
    rel_bias_te = jax.random.normal(keys[19], (nrelation, entity_dim), jnp.float32) * 0.1

    ok = True
    # Tolerances: f32 kernels checked tight; default (bf16 MXU operand) kernels
    # checked against the f32 references with a bf16-appropriate tolerance.
    TIGHT = dict(atol=2e-3, rtol=2e-3)
    BF16 = dict(atol=4e-2, rtol=4e-2)

    # ---- mlp ----
    ref = _ref_mlp(e_embedding, rid, relation_embedding, mlp_w, mlp_b)
    out = jax.block_until_ready(projection_mlp_forward(
        e_embedding, rid, relation_embedding, mlp_w, mlp_b, matmul_dtype=jnp.float32))
    ok &= bool(jnp.allclose(out, ref, **TIGHT))
    out = jax.block_until_ready(projection_mlp_forward(
        e_embedding, rid, relation_embedding, mlp_w, mlp_b))
    ok &= bool(jnp.allclose(out, ref, **BF16))
    out = jax.block_until_ready(projection_mlp_forward(          # large-vocab fallback
        e_embedding, rid, relation_embedding, mlp_w, mlp_b, max_gather_relations=0))
    ok &= bool(jnp.allclose(out, ref, **BF16))

    # ---- rtransform (non-dual) ----
    ref = _ref_rtransform(e_embedding, rid, rel_att, rel_base, rel_bias_nd)
    out = jax.block_until_ready(projection_rtransform_forward(
        e_embedding, rid, rel_att, rel_base, rel_bias_nd, matmul_dtype=jnp.float32))
    ok &= bool(jnp.allclose(out, ref, **TIGHT))
    out = jax.block_until_ready(projection_rtransform_forward(
        e_embedding, rid, rel_att, rel_base, rel_bias_nd))
    ok &= bool(jnp.allclose(out, ref, **BF16))

    # ---- rtransform (dual) ----
    ref = _ref_rtransform_dual(e_embedding, rid,
                               (rel_att1, rel_base1, rel_bias1),
                               (rel_att2, rel_base2, rel_bias2))
    out = jax.block_until_ready(projection_rtransform_dual_forward(
        e_embedding, rid, rel_att1, rel_base1, rel_bias1,
        rel_att2, rel_base2, rel_bias2, matmul_dtype=jnp.float32))
    ok &= bool(jnp.allclose(out, ref, **TIGHT))
    out = jax.block_until_ready(projection_rtransform_dual_forward(
        e_embedding, rid, rel_att1, rel_base1, rel_bias1,
        rel_att2, rel_base2, rel_bias2))
    ok &= bool(jnp.allclose(out, ref, **BF16))

    # ---- transe (pure f32) ----
    ref = _ref_transe(e_embedding, rid, rel_trans, rel_bias_te)
    out = jax.block_until_ready(projection_transe_forward(
        e_embedding, rid, rel_trans, rel_bias_te))
    ok &= bool(jnp.allclose(out, ref, **TIGHT))
    out = jax.block_until_ready(projection_transe_forward(       # large-vocab fallback
        e_embedding, rid, rel_trans, rel_bias_te, max_gather_relations=0))
    ok &= bool(jnp.allclose(out, ref, **TIGHT))

    if not ok:
        raise SystemExit("projection kernels did not match the references")
    print("KERNEL_OK")
</pallas_src>

<mosaic_0001>
module attributes {stable_mosaic.version = 11 : i64} {
  func.func @_mlp_gather_kernel(%arg0: i32, %arg1: memref<16x1xi32, #tpu.memory_space<vmem>>, %arg2: memref<16x32xf32, #tpu.memory_space<vmem>>, %arg3: memref<32x64xf32, #tpu.memory_space<vmem>>, %arg4: memref<12x64xf32, #tpu.memory_space<vmem>>, %arg5: memref<64x64xf32, #tpu.memory_space<vmem>>, %arg6: memref<1x64xf32, #tpu.memory_space<vmem>>, %arg7: memref<64x32xf32, #tpu.memory_space<vmem>>, %arg8: memref<1x32xf32, #tpu.memory_space<vmem>>, %arg9: memref<16x32xf32, #tpu.memory_space<vmem>>) attributes {dimension_semantics = [#tpu.dimension_semantics<parallel>], iteration_bounds = array<i64: 2>, scalar_prefetch = 0 : i64, scratch_operands = 0 : i64, tpu.core_type = #tpu.core_type<tc>, window_params = [{transform_indices = @transform_0, window_bounds = array<i64: 16, 1>}, {transform_indices = @transform_1, window_bounds = array<i64: 16, 32>}, {pipeline_mode = #tpu.pipeline_mode<synchronous>, transform_indices = @transform_2, window_bounds = array<i64: 32, 64>}, {pipeline_mode = #tpu.pipeline_mode<synchronous>, transform_indices = @transform_3, window_bounds = array<i64: 12, 64>}, {pipeline_mode = #tpu.pipeline_mode<synchronous>, transform_indices = @transform_4, window_bounds = array<i64: 64, 64>}, {pipeline_mode = #tpu.pipeline_mode<synchronous>, transform_indices = @transform_5, window_bounds = array<i64: 1, 64>}, {pipeline_mode = #tpu.pipeline_mode<synchronous>, transform_indices = @transform_6, window_bounds = array<i64: 64, 32>}, {pipeline_mode = #tpu.pipeline_mode<synchronous>, transform_indices = @transform_7, window_bounds = array<i64: 1, 32>}, {transform_indices = @transform_8, window_bounds = array<i64: 16, 32>}]} {
    %0 = tpu.iota {dimensions = array<i32: 1>} : vector<16x12xi32>
    %c0 = arith.constant 0 : index
    %c0_0 = arith.constant 0 : index
    %1 = vector.load %arg1[%c0, %c0_0] : memref<16x1xi32, #tpu.memory_space<vmem>>, vector<16x1xi32>
    %2 = vector.broadcast %1 : vector<16x1xi32> to vector<16x12xi32>
    %3 = arith.cmpi eq, %2, %0 : vector<16x12xi32>
    %4 = arith.extui %3 : vector<16x12xi1> to vector<16x12xi32>
    %5 = arith.sitofp %4 : vector<16x12xi32> to vector<16x12xf32>
    %c0_1 = arith.constant 0 : index
    %c0_2 = arith.constant 0 : index
    %6 = vector.load %arg2[%c0_1, %c0_2] : memref<16x32xf32, #tpu.memory_space<vmem>>, vector<16x32xf32>
    %c0_3 = arith.constant 0 : index
    %c0_4 = arith.constant 0 : index
    %7 = vector.load %arg3[%c0_3, %c0_4] : memref<32x64xf32, #tpu.memory_space<vmem>>, vector<32x64xf32>
    %cst = arith.constant dense<0.000000e+00> : vector<16x64xf32>
    %8 = tpu.matmul %6, %7, %cst {dimension_numbers = #tpu.dot_dimension_numbers<[1], [0], [0], [1], [0, 0, 1, 1], [], []>, precision = #tpu.contract_precision<fp32>} : vector<16x32xf32>, vector<32x64xf32>, vector<16x64xf32> -> vector<16x64xf32>
    %c0_5 = arith.constant 0 : index
    %c0_6 = arith.constant 0 : index
    %9 = vector.load %arg4[%c0_5, %c0_6] : memref<12x64xf32, #tpu.memory_space<vmem>>, vector<12x64xf32>
    %cst_7 = arith.constant dense<0.000000e+00> : vector<16x64xf32>
    %10 = tpu.matmul %5, %9, %cst_7 {dimension_numbers = #tpu.dot_dimension_numbers<[1], [0], [0], [1], [0, 0, 1, 1], [], []>, precision = #tpu.contract_precision<fp32>} : vector<16x12xf32>, vector<12x64xf32>, vector<16x64xf32> -> vector<16x64xf32>
    %11 = arith.addf %8, %10 : vector<16x64xf32>
    %cst_8 = arith.constant 0.000000e+00 : f32
    %12 = vector.broadcast %cst_8 : f32 to vector<16x64xf32>
    %13 = arith.maximumf %11, %12 : vector<16x64xf32>
    %c0_9 = arith.constant 0 : index
    %c0_10 = arith.constant 0 : index
    %14 = vector.load %arg5[%c0_9, %c0_10] : memref<64x64xf32, #tpu.memory_space<vmem>>, vector<64x64xf32>
    %cst_11 = arith.constant dense<0.000000e+00> : vector<16x64xf32>
    %15 = tpu.matmul %13, %14, %cst_11 {dimension_numbers = #tpu.dot_dimension_numbers<[1], [0], [0], [1], [0, 0, 1, 1], [], []>, precision = #tpu.contract_precision<fp32>} : vector<16x64xf32>, vector<64x64xf32>, vector<16x64xf32> -> vector<16x64xf32>
    %c0_12 = arith.constant 0 : index
    %c0_13 = arith.constant 0 : index
    %16 = vector.load %arg6[%c0_12, %c0_13] : memref<1x64xf32, #tpu.memory_space<vmem>>, vector<1x64xf32>
    %17 = vector.broadcast %16 : vector<1x64xf32> to vector<16x64xf32>
    %18 = arith.addf %15, %17 : vector<16x64xf32>
    %cst_14 = arith.constant 0.000000e+00 : f32
    %19 = vector.broadcast %cst_14 : f32 to vector<16x64xf32>
    %20 = arith.maximumf %18, %19 : vector<16x64xf32>
    %c0_15 = arith.constant 0 : index
    %c0_16 = arith.constant 0 : index
    %21 = vector.load %arg7[%c0_15, %c0_16] : memref<64x32xf32, #tpu.memory_space<vmem>>, vector<64x32xf32>
    %cst_17 = arith.constant dense<0.000000e+00> : vector<16x32xf32>
    %22 = tpu.matmul %20, %21, %cst_17 {dimension_numbers = #tpu.dot_dimension_numbers<[1], [0], [0], [1], [0, 0, 1, 1], [], []>, precision = #tpu.contract_precision<fp32>} : vector<16x64xf32>, vector<64x32xf32>, vector<16x32xf32> -> vector<16x32xf32>
    %c0_18 = arith.constant 0 : index
    %c0_19 = arith.constant 0 : index
    %23 = vector.load %arg8[%c0_18, %c0_19] : memref<1x32xf32, #tpu.memory_space<vmem>>, vector<1x32xf32>
    %24 = vector.broadcast %23 : vector<1x32xf32> to vector<16x32xf32>
    %25 = arith.addf %22, %24 : vector<16x32xf32>
    %cst_20 = arith.constant 0.000000e+00 : f32
    %cst_21 = arith.constant 1.000000e+00 : f32
    %26 = vector.broadcast %cst_20 : f32 to vector<16x32xf32>
    %27 = arith.maximumf %26, %25 : vector<16x32xf32>
    %28 = vector.broadcast %cst_21 : f32 to vector<16x32xf32>
    %29 = arith.minimumf %28, %27 : vector<16x32xf32>
    %c0_22 = arith.constant 0 : index
    %c0_23 = arith.constant 0 : index
    %30 = vector.load %arg9[%c0_22, %c0_23] : memref<16x32xf32, #tpu.memory_space<vmem>>, vector<16x32xf32>
    tpu.vector_store %arg9[%c0_22, %c0_23], %29 {strides = array<i32>} : memref<16x32xf32, #tpu.memory_space<vmem>>, vector<16x32xf32>,
    return
  }
  func.func @transform_0(%arg0: i32) -> (i32, i32) {
    %c0_i32 = arith.constant 0 : i32
    %c0_i32_0 = arith.constant 0 : i32
    return %arg0, %c0_i32 : i32, i32
  }
  func.func @transform_1(%arg0: i32) -> (i32, i32) {
    %c0_i32 = arith.constant 0 : i32
    %c0_i32_0 = arith.constant 0 : i32
    return %arg0, %c0_i32 : i32, i32
  }
  func.func @transform_2(%arg0: i32) -> (i32, i32) {
    %c0_i32 = arith.constant 0 : i32
    %c0_i32_0 = arith.constant 0 : i32
    %c0_i32_1 = arith.constant 0 : i32
    return %c0_i32, %c0_i32_0 : i32, i32
  }
  func.func @transform_3(%arg0: i32) -> (i32, i32) {
    %c0_i32 = arith.constant 0 : i32
    %c0_i32_0 = arith.constant 0 : i32
    %c0_i32_1 = arith.constant 0 : i32
    return %c0_i32, %c0_i32_0 : i32, i32
  }
  func.func @transform_4(%arg0: i32) -> (i32, i32) {
    %c0_i32 = arith.constant 0 : i32
    %c0_i32_0 = arith.constant 0 : i32
    %c0_i32_1 = arith.constant 0 : i32
    return %c0_i32, %c0_i32_0 : i32, i32
  }
  func.func @transform_5(%arg0: i32) -> (i32, i32) {
    %c0_i32 = arith.constant 0 : i32
    %c0_i32_0 = arith.constant 0 : i32
    %c0_i32_1 = arith.constant 0 : i32
    return %c0_i32, %c0_i32_0 : i32, i32
  }
  func.func @transform_6(%arg0: i32) -> (i32, i32) {
    %c0_i32 = arith.constant 0 : i32
    %c0_i32_0 = arith.constant 0 : i32
    %c0_i32_1 = arith.constant 0 : i32
    return %c0_i32, %c0_i32_0 : i32, i32
  }
  func.func @transform_7(%arg0: i32) -> (i32, i32) {
    %c0_i32 = arith.constant 0 : i32
    %c0_i32_0 = arith.constant 0 : i32
    %c0_i32_1 = arith.constant 0 : i32
    return %c0_i32, %c0_i32_0 : i32, i32
  }
  func.func @transform_8(%arg0: i32) -> (i32, i32) {
    %c0_i32 = arith.constant 0 : i32
    %c0_i32_0 = arith.constant 0 : i32
    return %arg0, %c0_i32 : i32, i32
  }
}

</mosaic_0001>

<bundles_post_ra>
// kernel: tpu_custom_call.1
= control target key start
LH: loop header
LB: loop body
LE: loop exit
PB: predicated region body
PF: predicated region fallthrough
CT: control target
= control target key end

     0   :  { %13 = vsyncpa [#allocation3], 0  ;;  %s2140_s0 = inlined_call_operand.vmem [shape: s32[32,1], index: 0, kind: input, shape index: {}]   ;;  %s2141_s1 = inlined_call_operand.vmem [shape: f32[32,32], index: 1, kind: input, shape index: {}]   ;;  %s2142_s2 = inlined_call_operand.hbm [shape: f32[32,64], index: 2, kind: input, shape index: {}]   ;;  %s2143_s3 = inlined_call_operand.hbm [shape: f32[12,64], index: 3, kind: input, shape index: {}]   ;;  %s2144_s4 = inlined_call_operand.vmem [shape: f32[64,64], index: 4, kind: input, shape index: {}]   ;;  %s2145_s5 = inlined_call_operand.vmem [shape: f32[1,64], index: 5, kind: input, shape index: {}]   ;;  %s2146_s6 = inlined_call_operand.vmem [shape: f32[64,32], index: 6, kind: input, shape index: {}]   ;;  %s2147_s7 = inlined_call_operand.vmem [shape: f32[1,32], index: 7, kind: input, shape index: {}]   ;;  %s2148_s8 = inlined_call_operand.hbm [shape: f32[32,32], index: 8, kind: output, shape index: {}]  }
   0x1   :  { %14 = vsyncpa [#allocation6], 0 }
   0x2   :  { %15 = vsyncpa [#allocation4], 0 }
   0x3   :  { %17 = vsyncpa [#allocation4 + $0x1], 0  ;;  %s1787_s27 = smov 0   ;;  %s1789_s28 = smov 0  }
   0x4   :  { %s1791_s29 = smov 0   ;;  %s1793_s30 = smov 0  }
   0x5 LB: > { %s1808_s9 = sadd.s32 4294967295, %s1732_s30   ;;  %s1506_s10 = sadd.s32 4294967294, %s1732_s30   ;;  %s1732_s30 = sphi %s1793_s30, %s2155_s30   ;;  %s1728_s29 = sphi %s1791_s29, %s2154_s29   ;;  %s1724_s28 = sphi %s1789_s28, %s2153_s28   ;;  %s1720_s27 = sphi %s1787_s27, %s2152_s27  }
   0x6   : > { %s1812_s11 = sadd.s32 1, %s1732_s30   ;;  %s208_s12 = sadd.s32 1, %s1728_s29 }
   0x7   : > { %s205_s13 = ssub.s32 %s1732_s30, %s1812_s11  ;;  %p218_p0 = scmp.ne.s32.totalorder %s1728_s29, %s1724_s28 }
   0x8   : > { %p206_p1 = scmp.eq.s32.totalorder %s205_s13, 0  ;;  %p219_p2 = scmp.eq.s32.totalorder %s1808_s9, 1 }
   0x9   : > { %p224_p3 = scmp.ne.s32.totalorder %s1724_s28, %s1720_s27  ;;  %p225_p4 = scmp.eq.s32.totalorder %s1506_s10, 1 }
   0xa   : > { %s1823_s14 = scalar_select %p206_p1, %s1728_s29, %s208_s12  }
   0xb   : > { %p1825_p5 = por %p219_p2, %p218_p0  ;;  %p1829_p6 = por %p225_p4, %p224_p3 }
   0xc   : > { %p1507_p7 = scmp.ge.s32.totalorder %s1732_s30, 1  ;;  %p232_p8 = scmp.lt.s32.totalorder %s1732_s30, 3 }
   0xd   : > { %p1554_p9 = scmp.eq.s32.totalorder %s1808_s9, 0  ;;  %s243_s20 = sshll.u32 %s2142_s2, 4  ;;  %s244_s20 = int_to_ptr.hbm [resolvable:$true] %s243_s20 }
   0xe   : > { %p1836_p10 = pnand %p1507_p7, %p232_p8  ;;  %s1734_s21 = smov [#allocation2]  }
   0xf   : > { %s245_s22 = sshll.u32 %s1734_s21, 4  ;;  %s257_s25 = sshll.u32 %s2143_s3, 4  ;;  %s246_s22 = int_to_ptr.vmem [resolvable:$true] %s245_s22  ;;  %s258_s25 = int_to_ptr.hbm [resolvable:$true] %s257_s25 }
  0x10   : > { %p1543_p11 = pneg %p1836_p10  ;;  %s1735_s26 = smov 128  }
  0x11   : > { %s1736_s10 = smov 8   ;;  %s1737_s12 = smov [#allocation5]  }
  0x12   : > { %p1544_p12 = pnand %p1554_p9, %p1543_p11  ;;  %s259_s13 = sshll.u32 %s1737_s12, 4  ;;  %s260_s13 = int_to_ptr.vmem [resolvable:$true] %s259_s13 }
  0x13   : > { %305 = sbr.rel (%p1836_p10) target bundleno = 666 (0x29a), region = 52 }
  0x14   : > { %1546 = dma.hbm_to_vmem [thread:$0]  (!%p1544_p12), %s244_s20, 512, %s246_s22, [#allocation3], %s1735_s26, %s1735_s26, %s1736_s10  }
  0x15   : > { %1549 = dma.hbm_to_vmem [thread:$0]  (!%p1544_p12), %s258_s25, 256, %s260_s13, [#allocation6], %s1735_s26, %s1735_s26, %s1736_s10  }
  0x18   : > { %1707 = dma.done.wait (%p1554_p9), [#allocation3], 512  }
  0x19   : > { %1709 = vsyncadd (%p1554_p9), [#allocation3], 4294966784 }
  0x1a   : > { %1711 = dma.done.wait (%p1554_p9), [#allocation6], 256  }
  0x1b   : > { %1713 = vsyncadd (%p1554_p9), [#allocation6], 4294967040  ;;  %s1515_s18 = sshll.u32 %s1808_s9, 1  ;;  %v1738_v0 = vmov 0   ;;  %vm394_vm0 = vcmask 1043456   ;;  %v385_v10 = vld [vmem:[#allocation5] sm:$0xff]  ;;  %v363_v39 = vlaneseq }
  0x1c   : > { %1599 = vset.pattern.permute.xlu0 %v1738_v0  ;;  %p351_p13 = scmp.lt.s32.totalorder %s1515_s18, 3  ;;  %v386_v2 = vld [vmem:[#allocation5 + $0x8] sm:$0xf]  ;;  %v414_v11 = vand.u32 4294901760, %v385_v10  ;;  %v384_v16 = vld [vmem:[#allocation2 + $0x18] sm:$0xff]  ;;  %v383_v18 = vld [vmem:[#allocation2 + $0x10] sm:$0xff] }
  0x1d   : > { %v396_v3 = vsel %vm394_vm0, %v386_v2, 0  ;;  %v607_v17 = vand.u32 4294901760, %v384_v16  ;;  %v1871_v20 = vand.u32 4294901760, %v383_v18  ;;  %v382_v21 = vld [vmem:[#allocation2 + $0x8] sm:$0xff]  ;;  %v381_v25 = vld [vmem:[#allocation2] sm:$0xff]  ;;  %vm588_vm1 = vcmask 261120  }
  0x1e   : > { %s2157_s18 = smov (!%p351_p13, %s1515_s18), 3  ;;  %v412_v4 = vand.u32 4294901760, %v396_v3  ;;  %v454_v12 = vsub.f32 %v385_v10, %v414_v11  ;;  %v1878_v24 = vand.u32 4294901760, %v382_v21  ;;  %v1886_v29 = vand.u32 4294901760, %v381_v25  ;;  %s347_s22 = sand.u32 1, %s1724_s28  }
  0x1f   : > { %s1516_s17 = sshll.u32 %s2157_s18, 3  ;;  %v1869_v19 = vsub.f32 %v384_v16, %v607_v17  ;;  %v1876_v23 = vsub.f32 %v383_v18, %v1871_v20  ;;  %v364_v42 = vand.u32 127, %v363_v39  ;;  %vm387_vm2 = vcmask 97280   ;;  %s1514_s23 = sshll.u32 %s347_s22, 4 }
  0x20   : > { %s354_s21 = scalar_lea.vmem %s2140_s0, %s1516_s17  ;;  %v448_v5 = vsub.f32 %v396_v3, %v412_v4  ;;  %514 = vmatpush.msra.mxu3 %v412_v4  ;;  %413 = vmatpush.msra.mxu0 %v412_v4  ;;  %v455_v13 = vand.u32 4294901760, %v454_v12  ;;  %v1884_v28 = vsub.f32 %v382_v21, %v1878_v24  ;;  %v1892_v33 = vsub.f32 %v381_v25, %v1886_v29  ;;  %s360_s24 = scalar_lea.vmem %s2141_s1, %s1516_s17 }
  0x21   : > { %v365_v1 = vld [vmem:[%s354_s21] sm:$0xff]  ;;  %v366_v6 = vld [vmem:[%s354_s21 + $0x8] sm:$0xff]  ;;  %v646_v22 = vand.u32 4294901760, %v1869_v19  ;;  %v652_v27 = vand.u32 4294901760, %v1876_v23  ;;  %v1739_v46 = vmov 0.0   ;;  %vm825_vm5 = vcmask 523264  }
  0x22   : > { %368 = vperm.xlu0 %1599, %v365_v1   ;;  %v449_v7 = vand.u32 4294901760, %v448_v5  ;;  %484 = vmatpush.msra.mxu2 %v448_v5  ;;  %v456_v14 = vsub.f32 %v454_v12, %v455_v13  ;;  %v658_v32 = vand.u32 4294901760, %v1884_v28  ;;  %v664_v36 = vand.u32 4294901760, %v1892_v33  ;;  %v379_v41 = vld [vmem:[%s360_s24] sm:$0xff]  ;;  %v380_v49 = vld [vmem:[%s360_s24 + $0x8] sm:$0xff]  ;;  %s1532_s24 = sshll.u32 %s1808_s9, 4 }
  0x23   : > { %516 = vmatpush.msra.mxu3 %v414_v11  ;;  %415 = vmatpush.msra.mxu0 %v414_v11  ;;  %v647_v26 = vsub.f32 %v1869_v19, %v646_v22  ;;  %v653_v31 = vsub.f32 %v1876_v23, %v652_v27  ;;  %v590_v43 = vsel %vm588_vm1, %v379_v41, 0  ;;  %v593_v53 = vsel %vm588_vm1, %v380_v49, 0  ;;  %s1406_s10 = scalar_lea.hbm %s2148_s8, %s1532_s24  ;;  %s349_s12 = scalar_lea.vmem [#allocation7], %s1514_s23 }
  0x24   : > { %v450_v8 = vsub.f32 %v448_v5, %v449_v7  ;;  %487 = vmatpush.msra.mxu2 %v454_v12  ;;  %v457_v15 = vand.u32 4294901760, %v456_v14  ;;  %v659_v35 = vsub.f32 %v1884_v28, %v658_v32  ;;  %v665_v38 = vsub.f32 %v1892_v33, %v664_v36  ;;  %s1407_s13 = sshll.u32 %s349_s12, 4  ;;  %s1409_s18 = sshll.u32 %s1406_s10, 4  ;;  %s1408_s13 = int_to_ptr.vmem [resolvable:$true] %s1407_s13  ;;  %s1410_s18 = int_to_ptr.hbm [resolvable:$true] %s1409_s18 }
  0x25   : > { %547 = vmatpush.msrb.mxu0 %v449_v7  ;;  %v648_v30 = vand.u32 4294901760, %v647_v26  ;;  %v654_v34 = vand.u32 4294901760, %v653_v31  ;;  %v615_v45 = vand.u32 4294901760, %v590_v43  ;;  %v623_v56 = vand.u32 4294901760, %v593_v53  ;;  %v820_v7 = vld [vmem:[%s2144_s4 + $0x38] sm:$0xff]  ;;  %s1395_s9 = scalar_lea.sflag [#allocation4], %s347_s22 }
  0x26   : > { %v451_v9 = vand.u32 4294901760, %v450_v8  ;;  %608 = vmatpush.msrb.mxu2 %v607_v17  ;;  %v660_v37 = vand.u32 4294901760, %v659_v35  ;;  %v666_v40 = vand.u32 4294901760, %v665_v38  ;;  %v1925_v8 = vand.u32 4294901760, %v820_v7  ;;  %s1676_s17 = sshra.s32 %s1410_s18, 4  ;;  %s1682_s23 = scalar_lea.hbm %s2148_s8, 32  ;;  %s1677_s17 = int_to_ptr.hbm [resolvable:$true] %s1676_s17 }
  0x27   : > { %551 = vmatpush.msrb.mxu0 %v455_v13  ;;  %649 = vmatpush.msrb.mxu3 %v648_v30  ;;  %v616_v51 = vsub.f32 %v590_v43, %v615_v45  ;;  %v624_v0 = vsub.f32 %v593_v53, %v623_v56  ;;  %v818_v13 = vld [vmem:[%s2144_s4 + $0x28] sm:$0xff]  ;;  %s1678_s19 = scalar_lea.hbm %s1677_s17, 16  ;;  %p1683_p3 = scmp.lt.s32.totalorder %s1677_s17, %s2148_s8 }
  0x28   : > { %452 = vmatpush.msra.mxu1 %v451_v9  ;;  %610 = vmatpush.msrb.mxu2 %v1871_v20  ;;  %v819_v9 = vld [vmem:[%s2144_s4 + $0x30] sm:$0xff]  ;;  %v1931_v10 = vsub.f32 %v820_v7, %v1925_v8  ;;  %v1947_v16 = vand.u32 4294901760, %v818_v13  ;;  %p1679_p0 = scmp.ne.s32.totalorder %s1677_s17, %s1678_s19  ;;  %p1684_p4 = scmp.lt.s32.totalorder %s1682_s23, %s1678_s19 }
  0x29   : > { %655 = vmatpush.msrb.mxu3 %v654_v34  ;;  %v617_v59 = vand.u32 4294901760, %v616_v51 }
  0x2a   : > { %371 = vperm.xlu0 %1599, %v366_v6   ;;  %458 = vmatpush.msra.mxu1 %v457_v15  ;;  %v883_v14 = vand.u32 4294901760, %v1931_v10  ;;  %p1680_p1 = pnand %p1679_p0, %p1825_p5  ;;  %p1685_p7 = por %p1684_p4, %p1683_p3 }
  0x2b   : > { %612 = vmatpush.msrb.mxu2 %v1878_v24  ;;  %661 = vmatpush.msrb.mxu3 %v660_v37  ;;  %v618_v63 = vsub.f32 %v616_v51, %v617_v59 }
  0x2c   : > { %576 = vmatpush.msrb.mxu1 %v412_v4  ;;  %v625_v4 = vand.u32 4294901760, %v624_v0  ;;  %v884_v18 = vsub.f32 %v1931_v10, %v883_v14  ;;  %p1681_p2 = pneg %p1680_p1 }
  0x2d   : > { %614 = vmatpush.msrb.mxu2 %v1886_v29  ;;  %667 = vmatpush.msrb.mxu3 %v666_v40  ;;  %v619_v3 = vand.u32 4294901760, %v618_v63 }
  0x2e   : > { %578 = vmatpush.msrb.mxu1 %v414_v11  ;;  %v626_v5 = vsub.f32 %v624_v0, %v625_v4  ;;  %v1933_v11 = vand.u32 4294901760, %v819_v9  ;;  %p1686_p8 = pnand %p1685_p7, %p1681_p2 }
  0x30   : > { %v627_v6 = vand.u32 4294901760, %v626_v5  ;;  %v1944_v15 = vsub.f32 %v819_v9, %v1933_v11 }
  0x94   : > { %v369_v44 = vpop.permute.xlu0 %368 }
  0x95   : > { %vm373_vm3 = vcmp.eq.s32.totalorder %v369_v44, %v364_v42  ;;  %v813_v44 = vld [vmem:[%s2144_s4] sm:$0xff] }
  0x96   : > { %v1519_v47 = vsel %vm373_vm3, 1.0, %v1739_v46 }
  0x97   : > { %1521 = vmatmul.msk.f32.vlgmr.msra.gmra.mxu1 %vm387_vm2, %v1519_v47  ;;  %v389_v48 = vsel %vm387_vm2, %v1519_v47, 0 }
  0x98   : > { %v417_v50 = vsub.f32 %v389_v48, %v389_v48  ;;  %725 = vmatpush.msra.mxu1 %v607_v17 }
  0x9a   : > { %490 = vmatmul.f32.vlgmr.msra.gmra.mxu2 %v417_v50  ;;  %v418_v52 = vand.u32 4294901760, %v417_v50  ;;  %727 = vmatpush.msra.mxu1 %v1871_v20 }
  0x9b   : > { %760 = vmatpush.msra.mxu2 %v646_v22  ;;  %v816_v22 = vld [vmem:[%s2144_s4 + $0x18] sm:$0xff] }
  0x9c   : > { %520 = vmatmul.f32.vlgmr.msra.gmra.mxu3 %v418_v52  ;;  %v372_v54 = vpop.permute.xlu0 %371  ;;  %v419_v55 = vsub.f32 %v417_v50, %v418_v52  ;;  %729 = vmatpush.msra.mxu1 %v1878_v24 }
  0x9d   : > { %vm374_vm4 = vcmp.eq.s32.totalorder %v372_v54, %v364_v42  ;;  %795 = vmatpush.msra.mxu3 %v607_v17  ;;  %764 = vmatpush.msra.mxu2 %v652_v27  ;;  %v817_v17 = vld [vmem:[%s2144_s4 + $0x20] sm:$0xff]  ;;  %v1978_v27 = vand.u32 4294901760, %v816_v22 }
  0x9e   : > { %v1520_v57 = vsel %vm374_vm4, 1.0, %v1739_v46  ;;  %v420_v58 = vand.u32 4294901760, %v419_v55  ;;  %731 = vmatpush.msra.mxu1 %v1886_v29  ;;  %v1962_v21 = vand.u32 4294901760, %v817_v17 }
  0x9f   : > { %1522 = vmatmul.msk.f32.gmra.mxu1 %vm387_vm2, %v1520_v57  ;;  %v392_v60 = vsel %vm387_vm2, %v1520_v57, 0  ;;  %797 = vmatpush.msra.mxu3 %v1871_v20  ;;  %v1959_v20 = vsub.f32 %v818_v13, %v1947_v16  ;;  %v906_v35 = vsub.f32 %v816_v22, %v1978_v27 }
  0xa0   : > { %421 = vmatmul.f32.vlgmr.msra.gmra.mxu0 %v420_v58  ;;  %v425_v61 = vsub.f32 %v392_v60, %v392_v60  ;;  %768 = vmatpush.msra.mxu2 %v658_v32  ;;  %v1974_v26 = vsub.f32 %v817_v17, %v1962_v21 }
  0xa1   : > { %691 = vmatpush.msra.mxu0 %v1869_v19  ;;  %799 = vmatpush.msra.mxu3 %v1878_v24  ;;  %v889_v19 = vand.u32 4294901760, %v1944_v15  ;;  %v895_v25 = vand.u32 4294901760, %v1959_v20  ;;  %v907_v42 = vand.u32 4294901760, %v906_v35 }
  0xa2   : > { %495 = vmatmul.f32.gmra.mxu2 %v425_v61  ;;  %v426_v62 = vand.u32 4294901760, %v425_v61  ;;  %v901_v31 = vand.u32 4294901760, %v1974_v26 }
  0xa3   : > { %694 = vmatpush.msra.mxu0 %v1876_v23  ;;  %772 = vmatpush.msra.mxu2 %v664_v36  ;;  %v885_v23 = vand.u32 4294901760, %v884_v18  ;;  %v890_v24 = vsub.f32 %v1944_v15, %v889_v19  ;;  %v896_v30 = vsub.f32 %v1959_v20, %v895_v25  ;;  %v814_v36 = vld [vmem:[%s2144_s4 + $0x8] sm:$0xff]  ;;  %v908_v48 = vsub.f32 %v906_v35, %v907_v42 }
  0xa4   : > { %526 = vmatmul.f32.gmra.mxu3 %v426_v62  ;;  %v427_v1 = vsub.f32 %v425_v61, %v426_v62  ;;  %v902_v38 = vsub.f32 %v1974_v26, %v901_v31  ;;  %v1999_v43 = vand.u32 4294901760, %v814_v36 }
  0xa5   : > { %697 = vmatpush.msra.mxu0 %v1884_v28  ;;  %801 = vmatpush.msra.mxu3 %v1886_v29  ;;  %v815_v28 = vld [vmem:[%s2144_s4 + $0x10] sm:$0xff]  ;;  %v891_v29 = vand.u32 4294901760, %v890_v24  ;;  %v897_v37 = vand.u32 4294901760, %v896_v30  ;;  %v909_v52 = vand.u32 4294901760, %v908_v48 }
  0xa6   : > { %v428_v2 = vand.u32 4294901760, %v427_v1  ;;  %v1989_v32 = vand.u32 4294901760, %v815_v28  ;;  %v918_v49 = vsub.f32 %v814_v36, %v1999_v43 }
  0xa7   : > { %1525 = vmatmul.msk.f32.vlgmr.msrb.gmra.mxu1 %vm387_vm2, %v1519_v47  ;;  %700 = vmatpush.msra.mxu0 %v1892_v33 }
  0xa8   : > { %429 = vmatmul.f32.gmra.mxu0 %v428_v2  ;;  %886 = vmatpush.msrb.mxu1 %v885_v23  ;;  %v912_v39 = vsub.f32 %v815_v28, %v1989_v32  ;;  %v919_v53 = vand.u32 4294901760, %v918_v49 }
  0xaa   : > { %620 = vmatmul.f32.vlgmr.msrb.gmra.mxu2 %v619_v3  ;;  %892 = vmatpush.msrb.mxu1 %v891_v29  ;;  %v913_v46 = vand.u32 4294901760, %v912_v39  ;;  %v920_v58 = vsub.f32 %v918_v49, %v919_v53 }
  0xab   : > { %948 = vmatpush.msrb.mxu2 %v1931_v10 }
  0xac   : > { %669 = vmatmul.f32.vlgmr.msrb.gmra.mxu3 %v615_v45  ;;  %898 = vmatpush.msrb.mxu1 %v897_v37  ;;  %v914_v50 = vsub.f32 %v912_v39, %v913_v46  ;;  %v921_v62 = vand.u32 4294901760, %v920_v58 }
  0xad   : > { %990 = vmatpush.msrb.mxu3 %v1925_v8  ;;  %951 = vmatpush.msrb.mxu2 %v1944_v15 }
  0xae   : > { %v915_v54 = vand.u32 4294901760, %v914_v50 }
  0xaf   : > { %1526 = vmatmul.msk.f32.gmra.mxu1 %vm387_vm2, %v1520_v57  ;;  %992 = vmatpush.msrb.mxu3 %v1933_v11 }
  0xb0   : > { %1523 = vmatmul.msk.f32.vlgmr.msrb.gmra.mxu0 %vm387_vm2, %v1519_v47  ;;  %954 = vmatpush.msrb.mxu2 %v1959_v20  ;;  %v854_v47 = vand.u32 4294901760, %v813_v44 }
  0xb1   : > { %841 = vmatpush.msrb.mxu0 %v1925_v8  ;;  %994 = vmatpush.msrb.mxu3 %v1947_v16 }
  0xb2   : > { %628 = vmatmul.f32.gmra.mxu2 %v627_v6 }
  0xb3   : > { %843 = vmatpush.msrb.mxu0 %v1933_v11  ;;  %996 = vmatpush.msrb.mxu3 %v1962_v21 }
  0xb4   : > { %673 = vmatmul.f32.gmra.mxu3 %v623_v56  ;;  %957 = vmatpush.msrb.mxu2 %v1974_v26 }
  0xb5   : > { %845 = vmatpush.msrb.mxu0 %v1947_v16  ;;  %998 = vmatpush.msrb.mxu3 %v1978_v27 }
  0xb6   : > { %960 = vmatpush.msrb.mxu2 %v906_v35 }
  0xb7   : > { %735 = vmatmul.f32.vlgmr.msra.gmra.mxu1 %v617_v59  ;;  %847 = vmatpush.msrb.mxu0 %v1962_v21 }
  0xb8   : > { %1524 = vmatmul.msk.f32.gmra.mxu0 %vm387_vm2, %v1520_v57  ;;  %1000 = vmatpush.msrb.mxu3 %v1989_v32 }
  0xb9   : > { %849 = vmatpush.msrb.mxu0 %v1978_v27  ;;  %963 = vmatpush.msrb.mxu2 %v912_v39 }
  0xba   : > { %774 = vmatmul.f32.vlgmr.msra.gmra.mxu2 %v615_v45  ;;  %1002 = vmatpush.msrb.mxu3 %v1999_v43 }
  0xbb   : > { %851 = vmatpush.msrb.mxu0 %v1989_v32  ;;  %966 = vmatpush.msrb.mxu2 %v918_v49 }
  0xbc   : > { %803 = vmatmul.f32.vlgmr.msra.gmra.mxu3 %v615_v45  ;;  %v903_v45 = vand.u32 4294901760, %v902_v38 }
  0xbd   : > { %853 = vmatpush.msrb.mxu0 %v1999_v43  ;;  %1004 = vmatpush.msrb.mxu3 %v854_v47 }
  0xbe   : > { %904 = vmatpush.msrb.mxu1 %v903_v45 }
  0xbf   : > { %741 = vmatmul.f32.gmra.mxu1 %v625_v4  ;;  %855 = vmatpush.msrb.mxu0 %v854_v47 }
  0xc0   : > { %703 = vmatmul.f32.vlgmr.msra.gmra.mxu0 %v616_v51  ;;  %v924_v51 = vsub.f32 %v813_v44, %v854_v47  ;;  %910 = vmatpush.msrb.mxu1 %v909_v52 }
  0xc1   : > { %1029 = vmatpush.msra.mxu0 %v883_v14 }
  0xc2   : > { %778 = vmatmul.f32.gmra.mxu2 %v623_v56  ;;  %v925_v55 = vand.u32 4294901760, %v924_v51  ;;  %916 = vmatpush.msrb.mxu1 %v915_v54 }
  0xc3   : > { %969 = vmatpush.msrb.mxu2 %v924_v51  ;;  %1033 = vmatpush.msra.mxu0 %v889_v19 }
  0xc4   : > { %807 = vmatmul.f32.gmra.mxu3 %v623_v56  ;;  %v926_v60 = vsub.f32 %v924_v51, %v925_v55  ;;  %922 = vmatpush.msrb.mxu1 %v921_v62  ;;  %v1109_v51 = vld [vmem:[%s2146_s6 + $0x38] sm:$0xff] }
  0xc5   : > { %1037 = vmatpush.msra.mxu0 %v895_v25  ;;  %v2028_v52 = vand.u32 4294901760, %v1109_v51 }
  0xc6   : > { %v927_v63 = vand.u32 4294901760, %v926_v60  ;;  %v1106_v60 = vld [vmem:[%s2146_s6 + $0x20] sm:$0xff] }
  0xc7   : > { %1041 = vmatpush.msra.mxu0 %v901_v31  ;;  %v2034_v54 = vsub.f32 %v1109_v51, %v2028_v52  ;;  %1129 = vmatpush.msra.mxu2 %v2028_v52 }
  0xc8   : > { %708 = vmatmul.f32.gmra.mxu0 %v624_v0  ;;  %928 = vmatpush.msrb.mxu1 %v927_v63 }
  0xc9   : > { %1045 = vmatpush.msra.mxu0 %v907_v42 }
  0xca   : > { %1076 = vmatpush.msra.mxu1 %v1925_v8 }
  0xcb   : > { %1049 = vmatpush.msra.mxu0 %v913_v46 }
  0xcc   : > { %1078 = vmatpush.msra.mxu1 %v1933_v11 }
  0xcd   : > { %1053 = vmatpush.msra.mxu0 %v919_v53  ;;  %v1108_v53 = vld [vmem:[%s2146_s6 + $0x30] sm:$0xff] }
  0xce   : > { %1080 = vmatpush.msra.mxu1 %v1947_v16 }
  0xcf   : > { %1057 = vmatpush.msra.mxu0 %v925_v55  ;;  %v2036_v55 = vand.u32 4294901760, %v1108_v53 }
  0xd0   : > { %1082 = vmatpush.msra.mxu1 %v1962_v21 }
  0xd1   : > { %v2045_v58 = vsub.f32 %v1108_v53, %v2036_v55  ;;  %1131 = vmatpush.msra.mxu2 %v2036_v55 }
  0xd2   : > { %1084 = vmatpush.msra.mxu1 %v1978_v27 }
  0xd3   : > { %v1177_v62 = vand.u32 4294901760, %v2045_v58 }
  0xd4   : > { %1086 = vmatpush.msra.mxu1 %v1989_v32 }
  0xd6   : > { %1088 = vmatpush.msra.mxu1 %v1999_v43 }
  0xd8   : > { %1090 = vmatpush.msra.mxu1 %v854_v47 }
 0x114   : > { %v1937_v12 = vpop.f32.mrf.mxu1 }
 0x11c   : > { %v465_v40 = vpop.f32.mrf.mxu1 }
 0x11d   : > { %v422_v33 = vpop.f32.mrf.mxu0  ;;  %v491_v34 = vpop.f32.mrf.mxu2 }
 0x11e   : > { %v462_v59 = vadd.f32 %v1937_v12, %v422_v33 }
 0x11f   : > { %v521_v41 = vpop.f32.mrf.mxu3 }
 0x120   : > { %v492_v1 = vadd.f32 %v491_v34, %v462_v59 }
 0x122   : > { %v522_v4 = vadd.f32 %v521_v41, %v492_v1  ;;  %v1105_v1 = vld [vmem:[%s2146_s6 + $0x18] sm:$0xff] }
 0x124   : > { %v581_v0 = vpop.f32.mrf.mxu1 }
 0x125   : > { %v430_v56 = vpop.f32.mrf.mxu0  ;;  %v496_v57 = vpop.f32.mrf.mxu2 }
 0x126   : > { %v466_v5 = vadd.f32 %v465_v40, %v430_v56  ;;  %v1107_v56 = vld [vmem:[%s2146_s6 + $0x28] sm:$0xff] }
 0x127   : > { %v527_v61 = vpop.f32.mrf.mxu3  ;;  %v2048_v59 = vand.u32 4294901760, %v1107_v56 }
 0x128   : > { %v497_v9 = vadd.f32 %v496_v57, %v466_v5  ;;  %v1171_v57 = vand.u32 4294901760, %v2034_v54 }
 0x129   : > { %v2060_v63 = vsub.f32 %v1107_v56, %v2048_v59  ;;  %1133 = vmatpush.msra.mxu2 %v2048_v59 }
 0x12a   : > { %v528_v14 = vadd.f32 %v527_v61, %v497_v9  ;;  %v1172_v61 = vsub.f32 %v2034_v54, %v1171_v57 }
 0x12c   : > { %v585_v10 = vpop.f32.mrf.mxu1 }
 0x12d   : > { %v554_v2 = vpop.f32.mrf.mxu0  ;;  %v621_v3 = vpop.f32.mrf.mxu2 }
 0x12e   : > { %v555_v7 = vadd.f32 %v554_v2, %v522_v4  ;;  %v1173_v2 = vand.u32 4294901760, %v1172_v61  ;;  %v1183_v4 = vand.u32 4294901760, %v2060_v63 }
 0x12f   : > { %v670_v6 = vpop.f32.mrf.mxu3 }
 0x130   : > { %v582_v12 = vadd.f32 %v581_v0, %v555_v7  ;;  %v2063_v0 = vand.u32 4294901760, %v1106_v60  ;;  %v1104_v7 = vld [vmem:[%s2146_s6 + $0x10] sm:$0xff]  ;;  %1174 = vmatpush.msra.mxu3 %v1173_v2 }
 0x132   : > { %v622_v15 = vadd.f32 %v621_v3, %v582_v12  ;;  %v1178_v3 = vsub.f32 %v2045_v58, %v1177_v62  ;;  %v1188_v5 = vsub.f32 %v1106_v60, %v2063_v0  ;;  %1135 = vmatpush.msra.mxu2 %v2063_v0 }
 0x134   : > { %v736_v16 = vpop.f32.mrf.mxu1  ;;  %v671_v18 = vadd.f32 %v670_v6, %v622_v15  ;;  %v2075_v6 = vand.u32 4294901760, %v1105_v1  ;;  %v1179_v9 = vand.u32 4294901760, %v1178_v3  ;;  %v1189_v12 = vand.u32 4294901760, %v1188_v5 }
 0x135   : > { %v558_v8 = vpop.f32.mrf.mxu0  ;;  %v629_v13 = vpop.f32.mrf.mxu2 }
 0x136   : > { %v559_v17 = vadd.f32 %v558_v8, %v528_v14  ;;  %v1138_v8 = vand.u32 4294901760, %v1104_v7  ;;  %v1103_v14 = vld [vmem:[%s2146_s6 + $0x8] sm:$0xff]  ;;  %1137 = vmatpush.msra.mxu2 %v2075_v6  ;;  %1180 = vmatpush.msra.mxu3 %v1179_v9  ;;  %v1190_v15 = vsub.f32 %v1188_v5, %v1189_v12 }
 0x137   : > { %v674_v11 = vpop.f32.mrf.mxu3 }
 0x138   : > { %v586_v19 = vadd.f32 %v585_v10, %v559_v17  ;;  %v1184_v10 = vsub.f32 %v2060_v63, %v1183_v4  ;;  %v1200_v17 = vsub.f32 %v1104_v7, %v1138_v8  ;;  %1139 = vmatpush.msra.mxu2 %v1138_v8 }
 0x13a   : > { %v630_v24 = vadd.f32 %v629_v13, %v586_v19  ;;  %v1194_v13 = vsub.f32 %v1105_v1, %v2075_v6  ;;  %v1102_v19 = vld [vmem:[%s2146_s6] sm:$0xff] }
 0x13c   : > { %v675_v27 = vadd.f32 %v674_v11, %v630_v24  ;;  %v742_v30 = vpop.f32.mrf.mxu1  ;;  %v1185_v11 = vand.u32 4294901760, %v1184_v10 }
 0x13d   : > { %v704_v20 = vpop.f32.mrf.mxu0  ;;  %v775_v21 = vpop.f32.mrf.mxu2 }
 0x13e   : > { %v705_v22 = vadd.f32 %v704_v20, %v671_v18  ;;  %v1195_v18 = vand.u32 4294901760, %v1194_v13  ;;  %1186 = vmatpush.msra.mxu3 %v1185_v11  ;;  %v1191_v20 = vand.u32 4294901760, %v1190_v15 }
 0x13f   : > { %v804_v23 = vpop.f32.mrf.mxu3 }
 0x140   : > { %v737_v25 = vadd.f32 %v736_v16, %v705_v22  ;;  %v1140_v16 = vand.u32 4294901760, %v1103_v14  ;;  %v1196_v24 = vsub.f32 %v1194_v13, %v1195_v18  ;;  %1192 = vmatpush.msra.mxu3 %v1191_v20 }
 0x142   : > { %v776_v26 = vadd.f32 %v775_v21, %v737_v25  ;;  %v1201_v21 = vand.u32 4294901760, %v1200_v17  ;;  %v1206_v22 = vsub.f32 %v1103_v14, %v1140_v16  ;;  %1141 = vmatpush.msra.mxu2 %v1140_v16 }
 0x144   : > { %v805_v28 = vadd.f32 %v804_v23, %v776_v26  ;;  %v1142_v23 = vand.u32 4294901760, %v1102_v19  ;;  %v1202_v25 = vsub.f32 %v1200_v17, %v1201_v21  ;;  %v1207_v26 = vand.u32 4294901760, %v1206_v22 }
 0x145   : > { %v709_v29 = vpop.f32.mrf.mxu0  ;;  %v779_v33 = vpop.f32.mrf.mxu2 }
 0x146   : > { %v811_v31 = vmax.f32 %v805_v28, 0.0  ;;  %v710_v32 = vadd.f32 %v709_v29, %v675_v27  ;;  %v1212_v27 = vsub.f32 %v1102_v19, %v1142_v23  ;;  %v1197_v28 = vand.u32 4294901760, %v1196_v24  ;;  %1143 = vmatpush.msra.mxu2 %v1142_v23 }
 0x147   : > { %v808_v37 = vpop.f32.mrf.mxu3  ;;  %v1203_v29 = vand.u32 4294901760, %v1202_v25 }
 0x148   : > { %v827_v34 = vsel %vm825_vm5, %v811_v31, 0  ;;  %v743_v35 = vadd.f32 %v742_v30, %v710_v32  ;;  %v1208_v30 = vsub.f32 %v1206_v22, %v1207_v26  ;;  %v1213_v31 = vand.u32 4294901760, %v1212_v27  ;;  %1198 = vmatpush.msra.mxu3 %v1197_v28 }
 0x149   : > { %v856_v36 = vand.u32 4294901760, %v827_v34 }
 0x14a   : > { %v780_v38 = vadd.f32 %v779_v33, %v743_v35  ;;  %v1209_v32 = vand.u32 4294901760, %v1208_v30  ;;  %v1214_v33 = vsub.f32 %v1212_v27, %v1213_v31  ;;  %1204 = vmatpush.msra.mxu3 %v1203_v29 }
 0x14b   : > { %v857_v39 = vsub.f32 %v827_v34, %v856_v36  ;;  %930 = vmatmul.f32.vlgmr.msrb.gmra.mxu1 %v856_v36 }
 0x14c   : > { %v809_v40 = vadd.f32 %v808_v37, %v780_v38  ;;  %1278 = vmatpush.msrb.mxu1 %v2028_v52  ;;  %v1215_v34 = vand.u32 4294901760, %v1214_v33  ;;  %1210 = vmatpush.msra.mxu3 %v1209_v32 }
 0x14d   : > { %972 = vmatmul.f32.vlgmr.msrb.gmra.mxu2 %v857_v39  ;;  %v858_v41 = vand.u32 4294901760, %v857_v39 }
 0x14e   : > { %v812_v42 = vmax.f32 %v809_v40, 0.0  ;;  %1280 = vmatpush.msrb.mxu1 %v2036_v55  ;;  %1317 = vmatpush.msrb.mxu2 %v1171_v57 }
 0x14f   : > { %1008 = vmatmul.f32.vlgmr.msrb.gmra.mxu3 %v858_v41  ;;  %v859_v43 = vsub.f32 %v857_v39, %v858_v41 }
 0x150   : > { %v830_v44 = vsel %vm825_vm5, %v812_v42, 0  ;;  %1282 = vmatpush.msrb.mxu1 %v2048_v59  ;;  %1321 = vmatpush.msrb.mxu2 %v1177_v62 }
 0x151   : > { %v864_v45 = vand.u32 4294901760, %v830_v44  ;;  %v860_v46 = vand.u32 4294901760, %v859_v43  ;;  %1216 = vmatpush.msra.mxu3 %v1215_v34 }
 0x152   : > { %1284 = vmatpush.msrb.mxu1 %v2063_v0  ;;  %1325 = vmatpush.msrb.mxu2 %v1183_v4 }
 0x153   : > { %861 = vmatmul.f32.vlgmr.msrb.gmra.mxu0 %v860_v46  ;;  %934 = vmatmul.f32.gmra.mxu1 %v864_v45  ;;  %v865_v47 = vsub.f32 %v830_v44, %v864_v45 }
 0x154   : > { %1236 = vmatpush.msrb.mxu0 %v2034_v54  ;;  %1286 = vmatpush.msrb.mxu1 %v2075_v6 }
 0x155   : > { %977 = vmatmul.f32.gmra.mxu2 %v865_v47  ;;  %v866_v48 = vand.u32 4294901760, %v865_v47  ;;  %1364 = vmatpush.msrb.mxu3 %v2028_v52 }
 0x156   : > { %1239 = vmatpush.msrb.mxu0 %v2045_v58  ;;  %1288 = vmatpush.msrb.mxu1 %v1138_v8 }
 0x157   : > { %1014 = vmatmul.f32.gmra.mxu3 %v866_v48  ;;  %v867_v49 = vsub.f32 %v865_v47, %v866_v48  ;;  %1329 = vmatpush.msrb.mxu2 %v1189_v12 }
 0x158   : > { %1242 = vmatpush.msrb.mxu0 %v2060_v63  ;;  %1290 = vmatpush.msrb.mxu1 %v1140_v16 }
 0x159   : > { %v868_v50 = vand.u32 4294901760, %v867_v49  ;;  %1366 = vmatpush.msrb.mxu3 %v2036_v55  ;;  %1333 = vmatpush.msrb.mxu2 %v1195_v18 }
 0x15a   : > { %1245 = vmatpush.msrb.mxu0 %v1188_v5  ;;  %1292 = vmatpush.msrb.mxu1 %v1142_v23 }
 0x15b   : > { %869 = vmatmul.f32.gmra.mxu0 %v868_v50  ;;  %1092 = vmatmul.f32.vlgmr.msra.gmra.mxu1 %v856_v36 }
 0x15c   : > { %1248 = vmatpush.msrb.mxu0 %v1194_v13  ;;  %1368 = vmatpush.msrb.mxu3 %v2048_v59 }
 0x15d   : > { %1337 = vmatpush.msrb.mxu2 %v1201_v21 }
 0x15e   : > { %1251 = vmatpush.msrb.mxu0 %v1200_v17  ;;  %1370 = vmatpush.msrb.mxu3 %v2063_v0 }
 0x15f   : > { %1341 = vmatpush.msrb.mxu2 %v1207_v26 }
 0x160   : > { %1254 = vmatpush.msrb.mxu0 %v1206_v22  ;;  %1372 = vmatpush.msrb.mxu3 %v2075_v6 }
 0x161   : > { %1345 = vmatpush.msrb.mxu2 %v1213_v31 }
 0x162   : > { %1257 = vmatpush.msrb.mxu0 %v1212_v27  ;;  %1374 = vmatpush.msrb.mxu3 %v1138_v8  ;;  %v1601_v8 = vld [vmem:[%s2147_s7] ss:$0 sm:$0xff] }
 0x163   : > { %1059 = vmatmul.f32.vlgmr.msra.gmra.mxu0 %v856_v36  ;;  %1096 = vmatmul.f32.gmra.mxu1 %v864_v45  ;;  %v1600_v36 = vld [vmem:[%s2145_s5] ss:$0 sm:$0xff] }
 0x164   : > { %1376 = vmatpush.msrb.mxu3 %v1140_v16 }
 0x166   : > { %1378 = vmatpush.msrb.mxu3 %v1142_v23 }
 0x16b   : > { %1063 = vmatmul.f32.gmra.mxu0 %v864_v45 }
 0x1c8   : > { %v931_v35 = vpop.f32.mrf.mxu1 }
 0x1d0   : > { %v862_v37 = vpop.f32.mrf.mxu0  ;;  %v935_v39 = vpop.f32.mrf.mxu1 }
 0x1d1   : > { %v863_v38 = vadd.f32 %v1600_v36, %v862_v37  ;;  %v973_v41 = vpop.f32.mrf.mxu2 }
 0x1d2   : > { %v1009_v45 = vpop.f32.mrf.mxu3 }
 0x1d3   : > { %v932_v40 = vadd.f32 %v931_v35, %v863_v38 }
 0x1d5   : > { %v974_v43 = vadd.f32 %v973_v41, %v932_v40 }
 0x1d7   : > { %v1010_v46 = vadd.f32 %v1009_v45, %v974_v43 }
 0x1d8   : > { %v870_v42 = vpop.f32.mrf.mxu0  ;;  %v1093_v48 = vpop.f32.mrf.mxu1 }
 0x1d9   : > { %v871_v44 = vadd.f32 %v1600_v36, %v870_v42  ;;  %v978_v51 = vpop.f32.mrf.mxu2 }
 0x1da   : > { %v1015_v55 = vpop.f32.mrf.mxu3 }
 0x1db   : > { %v936_v47 = vadd.f32 %v935_v39, %v871_v44 }
 0x1dd   : > { %v979_v52 = vadd.f32 %v978_v51, %v936_v47 }
 0x1df   : > { %v1016_v56 = vadd.f32 %v1015_v55, %v979_v52 }
 0x1e0   : > { %v1060_v49 = vpop.f32.mrf.mxu0  ;;  %v1097_v62 = vpop.f32.mrf.mxu1 }
 0x1e1   : > { %v1061_v50 = vadd.f32 %v1060_v49, %v1010_v46 }
 0x1e3   : > { %v1094_v53 = vadd.f32 %v1093_v48, %v1061_v50 }
 0x1e5   : > { %v1100_v54 = vmax.f32 %v1094_v53, 0.0 }
 0x1e7   : > { %v1115_v57 = vsel %vm825_vm5, %v1100_v54, 0 }
 0x1e8   : > { %v1144_v58 = vand.u32 4294901760, %v1115_v57  ;;  %v1064_v59 = vpop.f32.mrf.mxu0 }
 0x1e9   : > { %v1065_v60 = vadd.f32 %v1064_v59, %v1016_v56 }
 0x1ea   : > { %v1145_v61 = vsub.f32 %v1115_v57, %v1144_v58  ;;  %1218 = vmatmul.f32.vlgmr.msra.gmra.mxu3 %v1144_v58 }
 0x1eb   : > { %v1098_v63 = vadd.f32 %v1097_v62, %v1065_v60 }
 0x1ec   : > { %1260 = vmatmul.f32.vlgmr.msrb.gmra.mxu0 %v1145_v61  ;;  %v1146_v0 = vand.u32 4294901760, %v1145_v61 }
 0x1ed   : > { %v1101_v1 = vmax.f32 %v1098_v63, 0.0 }
 0x1ee   : > { %1296 = vmatmul.f32.vlgmr.msrb.gmra.mxu1 %v1146_v0  ;;  %v1147_v2 = vsub.f32 %v1145_v61, %v1146_v0 }
 0x1ef   : > { %v1118_v3 = vsel %vm825_vm5, %v1101_v1, 0 }
 0x1f0   : > { %v1152_v4 = vand.u32 4294901760, %v1118_v3  ;;  %v1148_v5 = vand.u32 4294901760, %v1147_v2 }
 0x1f2   : > { %1149 = vmatmul.f32.vlgmr.msra.gmra.mxu2 %v1148_v5  ;;  %1222 = vmatmul.f32.gmra.mxu3 %v1152_v4  ;;  %v1153_v6 = vsub.f32 %v1118_v3, %v1152_v4 }
 0x1f4   : > { %1265 = vmatmul.f32.gmra.mxu0 %v1153_v6  ;;  %v1154_v7 = vand.u32 4294901760, %v1153_v6 }
 0x1f6   : > { %1302 = vmatmul.f32.gmra.mxu1 %v1154_v7  ;;  %v1155_v9 = vsub.f32 %v1153_v6, %v1154_v7 }
 0x1f8   : > { %v1156_v10 = vand.u32 4294901760, %v1155_v9 }
 0x1fa   : > { %1157 = vmatmul.f32.gmra.mxu2 %v1156_v10  ;;  %1380 = vmatmul.f32.vlgmr.msrb.gmra.mxu3 %v1144_v58 }
 0x202   : > { %1347 = vmatmul.f32.vlgmr.msrb.gmra.mxu2 %v1144_v58  ;;  %1384 = vmatmul.f32.gmra.mxu3 %v1152_v4 }
 0x20a   : > { %1351 = vmatmul.f32.gmra.mxu2 %v1152_v4 }
 0x269   : > { %v1261_v17 = vpop.f32.mrf.mxu0 }
 0x26b   : > { %v1297_v20 = vpop.f32.mrf.mxu1 }
 0x26d   : > { %v1219_v12 = vpop.f32.mrf.mxu3 }
 0x271   : > { %v1266_v26 = vpop.f32.mrf.mxu0 }
 0x273   : > { %v1303_v30 = vpop.f32.mrf.mxu1 }
 0x275   : > { %v1150_v13 = vpop.f32.mrf.mxu2  ;;  %v1223_v11 = vpop.f32.mrf.mxu3 }
 0x276   : > { %v1151_v14 = vadd.f32 %v1601_v8, %v1150_v13 }
 0x278   : > { %v1220_v15 = vadd.f32 %v1219_v12, %v1151_v14 }
 0x27a   : > { %v1262_v19 = vadd.f32 %v1261_v17, %v1220_v15 }
 0x27c   : > { %v1298_v22 = vadd.f32 %v1297_v20, %v1262_v19 }
 0x27d   : > { %v1158_v16 = vpop.f32.mrf.mxu2  ;;  %v1381_v23 = vpop.f32.mrf.mxu3 }
 0x27e   : > { %v1159_v18 = vadd.f32 %v1601_v8, %v1158_v16 }
 0x280   : > { %v1224_v21 = vadd.f32 %v1223_v11, %v1159_v18 }
 0x282   : > { %v1267_v28 = vadd.f32 %v1266_v26, %v1224_v21 }
 0x284   : > { %v1304_v32 = vadd.f32 %v1303_v30, %v1267_v28 }
 0x285   : > { %v1348_v24 = vpop.f32.mrf.mxu2  ;;  %v1385_v35 = vpop.f32.mrf.mxu3 }
 0x286   : > { %v1349_v25 = vadd.f32 %v1348_v24, %v1298_v22 }
 0x288   : > { %v1382_v27 = vadd.f32 %v1381_v23, %v1349_v25 }
 0x28a   : > { %v1388_v29 = vmax.f32 %v1382_v27, 0.0 }
 0x28c   : > { %v1390_v31 = vmin.f32 %v1388_v29, 1.0 }
 0x28d   : > { %v1352_v33 = vpop.f32.mrf.mxu2 }
 0x28e   : > { %1392 = vst.msk [vmem:[%s349_s12] sm:$0xff] %vm588_vm1, %v1390_v31  ;;  %v1353_v34 = vadd.f32 %v1352_v33, %v1304_v32 }
 0x290   : > { %v1386_v36 = vadd.f32 %v1385_v35, %v1353_v34 }
 0x292   : > { %v1389_v37 = vmax.f32 %v1386_v36, 0.0 }
 0x294   : > { %v1391_v38 = vmin.f32 %v1389_v37, 1.0 }
 0x296   : > { %1393 = vst.msk [vmem:[%s349_s12 + $0x8] sm:$0xff] %vm588_vm1, %v1391_v38 }
 0x297   : > { %1689 = shalt.err (!%p1686_p8)
}
 0x298   : > { %s1740_s22 = smov 128   ;;  %s1741_s26 = smov 8  }
 0x299   : > { %1541 = dma.vmem_to_hbm [thread:$0]  (%p1825_p5), %s1408_s13, 256, %s1410_s18, %s1395_s9, %s1740_s22, %s1740_s22, %s1741_s26  }
 0x29a PF: > { %p1558_p9 = scmp.ge.s32.totalorder %s1732_s30, 2  ;;  %s1424_s10 = sand.u32 1, %s1720_s27  }
 0x29b   : > { %s1425_s12 = scalar_lea.sflag [#allocation4], %s1424_s10 }
 0x29c   : > { %p1551_p10 = pnand %p1558_p9, %p1829_p6 }
 0x29e   : > { %p1552_p11 = pneg %p1551_p10 }
 0x2a0   : > { %1715 = dma.done.wait (%p1552_p11), %s1425_s12, 256  }
 0x2a1   : > { %1717 = vsyncadd (%p1552_p11), %s1425_s12, 4294967040  ;;  %p20_p12 = scmp.ge.s32.totalorder %s1812_s11, 4   ;;  %s2152_s27 = smov %s1724_s28 }
 0x2a2   : > { %s2153_s28 = smov %s1728_s29  ;;  %s2154_s29 = smov %s1823_s14 }
 0x2a3   : > { %s2155_s30 = smov %s1812_s11  ;;  %22 = sbr.rel (!%p20_p12) target bundleno = 5 (0x5), region = 99 }
 0x2a8   :  { %1431 = vsyncpa [#allocation3], 1 }
 0x2a9   :  { %1433 = vsyncpa [#allocation3 + $0x1], 1 }
 0x2aa   :  { %1434 = vsyncpa [#allocation6], 1 }
 0x2ab   :  { %1435 = vsyncpa [#allocation4], 1 }
 0x2ac   :  { %1437 = vsyncpa [#allocation4 + $0x1], 1 }

</bundles_post_ra>
